<compile_context>
chip_gen: v7x
topology: tpu7x:2x2x1
jax: 0.10.0
libtpu: 0.0.40
codegen_flags: <defaults>
</compile_context>

<pallas_src>
import jax
import jax.numpy as jnp
from jax.experimental import pallas as pl
from jax.experimental.pallas import tpu as pltpu

NPAD = 128  # lane-dense padded class dimension (full MXU N tile)


def facial_model2_kernel(x_ref, wp_ref, bp_ref, wfc_ref, bfc_ref, o_ref):
    # x_ref: (TB, C*HW) f32 -- fully lane/sublane-dense 2D slab.
    x = x_ref[...]
    wp = wp_ref[...]                                   # (C, FEATP), carries the 1/(H*W) scale
    C = wp.shape[0]
    HW = x.shape[1] // C                               # static (trace-time) ints

    acc = bp_ref[...]                                  # (1, FEATP) bias, broadcasts over TB

    # K=C (=3) projection as an unrolled VPU broadcast-FMA: no MXU push needed.
    # Channel slices are static and 128-aligned (HW = 256), so they are pure
    # lane-dense views feeding a full-vreg XLU reduce.
    for c in range(C):                                 # static unroll (C known at trace time)
        s_c = jnp.sum(x[:, c * HW:(c + 1) * HW], axis=-1, keepdims=True)   # (TB, 1)
        acc = acc + s_c * wp[c:c + 1, :]               # (TB, FEATP)

    # Exact module head: x = relu(pretrained(x)); x = FC(x)
    feats = jnp.maximum(acc, 0.0)                      # F.relu on full unmasked vregs (FEATP=1024)
    out = jnp.dot(feats, wfc_ref[...],                 # (TB, 1024) @ (1024, 128): full MXU N tile
                  preferred_element_type=jnp.float32) + bfc_ref[...]
    o_ref[...] = out.astype(o_ref.dtype)               # unmasked lane-dense (TB, 128) store


def prepare_params(wp, bp, wfc, bfc, hw):
    """One-time weight prep (hoisted out of the forward path).

    Folds the 1/(H*W) GAP scale into wp and zero-pads FEAT -> multiple of 128
    and NCLS -> 128.  All padding is exact (padded contributions are zero).
    """
    C, FEAT = wp.shape
    NCLS = wfc.shape[1]
    FEATP = ((FEAT + 127) // 128) * 128                # 1000 -> 1024

    wp_p = jnp.zeros((C, FEATP), jnp.float32).at[:, :FEAT].set(wp * (1.0 / hw))
    bp_p = jnp.zeros((1, FEATP), jnp.float32).at[:, :FEAT].set(bp)
    wfc_p = jnp.zeros((FEATP, NPAD), jnp.float32).at[:FEAT, :NCLS].set(wfc)
    bfc_p = jnp.zeros((1, NPAD), jnp.float32).at[:, :NCLS].set(bfc)
    return wp_p, bp_p, wfc_p, bfc_p, NCLS


def facial_model2_forward(x, params, *, batch_tile=None):
    wp_p, bp_p, wfc_p, bfc_p, ncls = params
    B, C, H, W = x.shape
    CHW = C * H * W
    FEATP = wp_p.shape[1]

    # Wrapper-side layout plumbing (free): dense 2D input slab, contiguous DMA.
    x_flat = x.reshape(B, CHW)

    # Default: single grid step -- everything resident in VMEM, minimal overhead.
    TB = B if batch_tile is None else min(batch_tile, B)
    assert B % TB == 0, "batch must be divisible by the batch tile"
    grid = (B // TB,)
    # "parallel" only pays when there are multiple batch tiles to shard (v7x).
    sem = ("arbitrary",) if grid[0] == 1 else ("parallel",)

    out_pad = pl.pallas_call(
        facial_model2_kernel,
        out_shape=jax.ShapeDtypeStruct((B, NPAD), jnp.float32),
        grid_spec=pltpu.PrefetchScalarGridSpec(
            num_scalar_prefetch=0,
            grid=grid,
            in_specs=[
                pl.BlockSpec((TB, CHW), lambda b: (b, 0)),       # batch-tiled dense image slab
                pl.BlockSpec((C, FEATP), lambda b: (0, 0)),      # small weights: resident
                pl.BlockSpec((1, FEATP), lambda b: (0, 0)),
                pl.BlockSpec((FEATP, NPAD), lambda b: (0, 0)),
                pl.BlockSpec((1, NPAD), lambda b: (0, 0)),
            ],
            out_specs=pl.BlockSpec((TB, NPAD), lambda b: (b, 0)),
        ),
        compiler_params=pltpu.CompilerParams(dimension_semantics=sem),
    )(x_flat, wp_p, bp_p, wfc_p, bfc_p)

    # Padded columns [ncls:] are exactly zero -> slicing preserves exact results.
    return out_pad[:, :ncls]


if __name__ == "__main__":
    # Small shapes consistent with the module: NCHW image input, 3 channels.
    B, C, H, W = 16, 3, 16, 16
    FEAT = 1000   # EfficientNet-b4 head output dim
    NCLS = 2      # self.FC = nn.Linear(1000, 2)

    key = jax.random.PRNGKey(0)
    k_x, k_wp, k_bp, k_wfc, k_bfc = jax.random.split(key, 5)

    x = jax.random.normal(k_x, (B, C, H, W), dtype=jnp.float32)

    # Deterministic parameter init (synthetic weights, not a checkpoint load).
    wp = jax.random.normal(k_wp, (C, FEAT), dtype=jnp.float32) * 0.05       # stand-in backbone proj
    bp = jax.random.normal(k_bp, (1, FEAT), dtype=jnp.float32) * 0.05
    wfc = jax.random.normal(k_wfc, (FEAT, NCLS), dtype=jnp.float32) * 0.02  # self.FC weight (K, N)
    bfc = jax.random.normal(k_bfc, (1, NCLS), dtype=jnp.float32) * 0.02     # self.FC bias

    # Weight prep happens once, outside the hot path.
    params = prepare_params(wp, bp, wfc, bfc, H * W)
    params = jax.block_until_ready(params)

    out = facial_model2_forward(x, params)
    out = jax.block_until_ready(out)

    # Reference check in plain JAX (same math as the stand-in backbone + exact head).
    gap = jnp.mean(x.reshape(B, C, H * W), axis=-1)
    feats = jnp.maximum(gap @ wp + bp, 0.0)
    ref = feats @ wfc + bfc
    assert out.shape == (B, NCLS)
    assert jnp.allclose(out, ref, atol=1e-4, rtol=1e-4)

    print("KERNEL_OK")
</pallas_src>

<mosaic_0001>
module attributes {stable_mosaic.version = 11 : i64} {
  func.func @facial_model2_kernel(%arg0: i32, %arg1: memref<16x768xf32, #tpu.memory_space<vmem>>, %arg2: memref<3x1024xf32, #tpu.memory_space<vmem>>, %arg3: memref<1x1024xf32, #tpu.memory_space<vmem>>, %arg4: memref<1024x128xf32, #tpu.memory_space<vmem>>, %arg5: memref<1x128xf32, #tpu.memory_space<vmem>>, %arg6: memref<16x128xf32, #tpu.memory_space<vmem>>) attributes {dimension_semantics = [#tpu.dimension_semantics<arbitrary>], iteration_bounds = array<i64: 1>, scalar_prefetch = 0 : i64, scratch_operands = 0 : i64, tpu.core_type = #tpu.core_type<tc>, window_params = [{transform_indices = @transform_0, window_bounds = array<i64: 16, 768>}, {pipeline_mode = #tpu.pipeline_mode<synchronous>, transform_indices = @transform_1, window_bounds = array<i64: 3, 1024>}, {pipeline_mode = #tpu.pipeline_mode<synchronous>, transform_indices = @transform_2, window_bounds = array<i64: 1, 1024>}, {pipeline_mode = #tpu.pipeline_mode<synchronous>, transform_indices = @transform_3, window_bounds = array<i64: 1024, 128>}, {pipeline_mode = #tpu.pipeline_mode<synchronous>, transform_indices = @transform_4, window_bounds = array<i64: 1, 128>}, {transform_indices = @transform_5, window_bounds = array<i64: 16, 128>}]} {
    %c0 = arith.constant 0 : index
    %c0_0 = arith.constant 0 : index
    %0 = vector.load %arg1[%c0, %c0_0] : memref<16x768xf32, #tpu.memory_space<vmem>>, vector<16x768xf32>
    %c0_1 = arith.constant 0 : index
    %c0_2 = arith.constant 0 : index
    %1 = vector.load %arg2[%c0_1, %c0_2] : memref<3x1024xf32, #tpu.memory_space<vmem>>, vector<3x1024xf32>
    %c0_3 = arith.constant 0 : index
    %c0_4 = arith.constant 0 : index
    %2 = vector.load %arg3[%c0_3, %c0_4] : memref<1x1024xf32, #tpu.memory_space<vmem>>, vector<1x1024xf32>
    %3 = vector.extract_strided_slice %0 {offsets = [0, 0], sizes = [16, 256], strides = [1, 1]} : vector<16x768xf32> to vector<16x256xf32>
    %cst = arith.constant dense<0.000000e+00> : vector<16xf32>
    %4 = vector.multi_reduction <add>, %3, %cst [1] : vector<16x256xf32> to vector<16xf32>
    %5 = vector.shape_cast %4 : vector<16xf32> to vector<16x1xf32>
    %6 = vector.extract_strided_slice %1 {offsets = [0, 0], sizes = [1, 1024], strides = [1, 1]} : vector<3x1024xf32> to vector<1x1024xf32>
    %7 = vector.broadcast %5 : vector<16x1xf32> to vector<16x1024xf32>
    %8 = vector.broadcast %6 : vector<1x1024xf32> to vector<16x1024xf32>
    %9 = arith.mulf %7, %8 : vector<16x1024xf32>
    %10 = vector.broadcast %2 : vector<1x1024xf32> to vector<16x1024xf32>
    %11 = arith.addf %10, %9 : vector<16x1024xf32>
    %12 = vector.extract_strided_slice %0 {offsets = [0, 256], sizes = [16, 256], strides = [1, 1]} : vector<16x768xf32> to vector<16x256xf32>
    %cst_5 = arith.constant dense<0.000000e+00> : vector<16xf32>
    %13 = vector.multi_reduction <add>, %12, %cst_5 [1] : vector<16x256xf32> to vector<16xf32>
    %14 = vector.shape_cast %13 : vector<16xf32> to vector<16x1xf32>
    %15 = vector.extract_strided_slice %1 {offsets = [1, 0], sizes = [1, 1024], strides = [1, 1]} : vector<3x1024xf32> to vector<1x1024xf32>
    %16 = vector.broadcast %14 : vector<16x1xf32> to vector<16x1024xf32>
    %17 = vector.broadcast %15 : vector<1x1024xf32> to vector<16x1024xf32>
    %18 = arith.mulf %16, %17 : vector<16x1024xf32>
    %19 = arith.addf %11, %18 : vector<16x1024xf32>
    %20 = vector.extract_strided_slice %0 {offsets = [0, 512], sizes = [16, 256], strides = [1, 1]} : vector<16x768xf32> to vector<16x256xf32>
    %cst_6 = arith.constant dense<0.000000e+00> : vector<16xf32>
    %21 = vector.multi_reduction <add>, %20, %cst_6 [1] : vector<16x256xf32> to vector<16xf32>
    %22 = vector.shape_cast %21 : vector<16xf32> to vector<16x1xf32>
    %23 = vector.extract_strided_slice %1 {offsets = [2, 0], sizes = [1, 1024], strides = [1, 1]} : vector<3x1024xf32> to vector<1x1024xf32>
    %24 = vector.broadcast %22 : vector<16x1xf32> to vector<16x1024xf32>
    %25 = vector.broadcast %23 : vector<1x1024xf32> to vector<16x1024xf32>
    %26 = arith.mulf %24, %25 : vector<16x1024xf32>
    %27 = arith.addf %19, %26 : vector<16x1024xf32>
    %cst_7 = arith.constant 0.000000e+00 : f32
    %28 = vector.broadcast %cst_7 : f32 to vector<16x1024xf32>
    %29 = arith.maximumf %27, %28 : vector<16x1024xf32>
    %c0_8 = arith.constant 0 : index
    %c0_9 = arith.constant 0 : index
    %30 = vector.load %arg4[%c0_8, %c0_9] : memref<1024x128xf32, #tpu.memory_space<vmem>>, vector<1024x128xf32>
    %cst_10 = arith.constant dense<0.000000e+00> : vector<16x128xf32>
    %31 = tpu.matmul %29, %30, %cst_10 {dimension_numbers = #tpu.dot_dimension_numbers<[1], [0], [0], [1], [0, 0, 1, 1], [], []>} : vector<16x1024xf32>, vector<1024x128xf32>, vector<16x128xf32> -> vector<16x128xf32>
    %c0_11 = arith.constant 0 : index
    %c0_12 = arith.constant 0 : index
    %32 = vector.load %arg5[%c0_11, %c0_12] : memref<1x128xf32, #tpu.memory_space<vmem>>, vector<1x128xf32>
    %33 = vector.broadcast %32 : vector<1x128xf32> to vector<16x128xf32>
    %34 = arith.addf %31, %33 : vector<16x128xf32>
    %c0_13 = arith.constant 0 : index
    %c0_14 = arith.constant 0 : index
    %35 = vector.load %arg6[%c0_13, %c0_14] : memref<16x128xf32, #tpu.memory_space<vmem>>, vector<16x128xf32>
    tpu.vector_store %arg6[%c0_13, %c0_14], %34 {strides = array<i32>} : memref<16x128xf32, #tpu.memory_space<vmem>>, vector<16x128xf32>,
    return
  }
  func.func @transform_0(%arg0: i32) -> (i32, i32) {
    %c0_i32 = arith.constant 0 : i32
    %c0_i32_0 = arith.constant 0 : i32
    return %arg0, %c0_i32 : i32, i32
  }
  func.func @transform_1(%arg0: i32) -> (i32, i32) {
    %c0_i32 = arith.constant 0 : i32
    %c0_i32_0 = arith.constant 0 : i32
    %c0_i32_1 = arith.constant 0 : i32
    return %c0_i32, %c0_i32_0 : i32, i32
  }
  func.func @transform_2(%arg0: i32) -> (i32, i32) {
    %c0_i32 = arith.constant 0 : i32
    %c0_i32_0 = arith.constant 0 : i32
    %c0_i32_1 = arith.constant 0 : i32
    return %c0_i32, %c0_i32_0 : i32, i32
  }
  func.func @transform_3(%arg0: i32) -> (i32, i32) {
    %c0_i32 = arith.constant 0 : i32
    %c0_i32_0 = arith.constant 0 : i32
    %c0_i32_1 = arith.constant 0 : i32
    return %c0_i32, %c0_i32_0 : i32, i32
  }
  func.func @transform_4(%arg0: i32) -> (i32, i32) {
    %c0_i32 = arith.constant 0 : i32
    %c0_i32_0 = arith.constant 0 : i32
    %c0_i32_1 = arith.constant 0 : i32
    return %c0_i32, %c0_i32_0 : i32, i32
  }
  func.func @transform_5(%arg0: i32) -> (i32, i32) {
    %c0_i32 = arith.constant 0 : i32
    %c0_i32_0 = arith.constant 0 : i32
    return %arg0, %c0_i32 : i32, i32
  }
}

</mosaic_0001>

<bundles_post_ra>
// kernel: tpu_custom_call.1
= control target key start
LH: loop header
LB: loop body
LE: loop exit
PB: predicated region body
PF: predicated region fallthrough
CT: control target
= control target key end

     0   :  { %10 = vsyncpa [#allocation3], 0  ;;  %s1793_s0 = inlined_call_operand.hbm [shape: f32[16,768], index: 0, kind: input, shape index: {}]   ;;  %s1794_s1 = inlined_call_operand.hbm [shape: f32[3,1024], index: 1, kind: input, shape index: {}]   ;;  %s1795_s2 = inlined_call_operand.hbm [shape: f32[1,1024], index: 2, kind: input, shape index: {}]   ;;  %s1796_s3 = inlined_call_operand.hbm [shape: f32[1024,128], index: 3, kind: input, shape index: {}]   ;;  %s1797_s4 = inlined_call_operand.vmem [shape: f32[1,128], index: 4, kind: input, shape index: {}]   ;;  %s1798_s5 = inlined_call_operand.hbm [shape: f32[16,128], index: 5, kind: output, shape index: {}]  }
   0x1   :  { %11 = vsyncpa [#allocation6], 0 }
   0x2   :  { %12 = vsyncpa [#allocation9], 0 }
   0x3   :  { %13 = vsyncpa [#allocation4], 0  ;;  %s1344_s18 = smov [#allocation5]   ;;  %s1345_s20 = smov [#allocation2]  }
   0x4   :  { %s32_s19 = sshll.u32 %s1344_s18, 4  ;;  %s19_s21 = sshll.u32 %s1345_s20, 4  ;;  %s33_s19 = int_to_ptr.vmem [resolvable:$true] %s32_s19  ;;  %s1383_s21 = int_to_ptr.vmem [resolvable:$true] %s19_s21 }
   0x5   :  { %s1226_s24 = scalar_lea.hbm %s1794_s1, 512 }
   0x6   :  { %p1227_p0 = scmp.ne.s32.totalorder %s1794_s1, %s1226_s24  ;;  %p1230_p1 = scmp.lt.u32.totalorder %s1226_s24, %s1794_s1 }
   0x8   :  { %p1232_p2 = pnand %p1230_p1, %p1227_p0 }
   0xa   :  { %1235 = shalt.err (!%p1232_p2)
}
   0xb   :  { %s1236_s29 = scalar_lea.vmem %s33_s19, 512  ;;  %p1241_p4 = scmp.lt.s32.totalorder %s33_s19, %s33_s19 }
   0xc   :  { %p1237_p3 = scmp.ne.s32.totalorder %s33_s19, %s1236_s29  ;;  %p1242_p5 = scmp.lt.s32.totalorder %s1236_s29, %s1236_s29 }
   0xe   :  { %p1243_p6 = por %p1242_p5, %p1241_p4 }
  0x10   :  { %p1244_p7 = pnand %p1243_p6, %p1237_p3 }
  0x12   :  { %1247 = shalt.err (!%p1244_p7)
}
  0x13   :  { %35 = dma.hbm_to_vmem [thread:$0]  %s1794_s1, 512, %s33_s19, [#allocation6]  }
  0x14   :  { %s1248_s9 = scalar_lea.hbm %s1793_s0, 1536 }
  0x15   :  { %p1249_p8 = scmp.ne.s32.totalorder %s1793_s0, %s1248_s9  ;;  %p1252_p9 = scmp.lt.u32.totalorder %s1248_s9, %s1793_s0 }
  0x17   :  { %p1254_p10 = pnand %p1252_p9, %p1249_p8 }
  0x19   :  { %1257 = shalt.err (!%p1254_p10)
}
  0x1a   :  { %s1258_s14 = scalar_lea.vmem %s1383_s21, 1536  ;;  %p1263_p12 = scmp.lt.s32.totalorder %s1383_s21, %s1383_s21 }
  0x1b   :  { %p1259_p11 = scmp.ne.s32.totalorder %s1383_s21, %s1258_s14  ;;  %p1264_p13 = scmp.lt.s32.totalorder %s1258_s14, %s1258_s14 }
  0x1d   :  { %p1265_p0 = por %p1264_p13, %p1263_p12 }
  0x1f   :  { %p1266_p1 = pnand %p1265_p0, %p1259_p11 }
  0x21   :  { %1269 = shalt.err (!%p1266_p1)
}
  0x22   :  { %s1346_s1 = smov 768   ;;  %s1347_s15 = smov 48  }
  0x23   :  { %25 = dma.hbm_to_vmem [thread:$0]  %s1793_s0, 1536, %s1383_s21, [#allocation3], %s1346_s1, %s1346_s1, %s1347_s15  }
  0x24   :  { %s1348_s18 = smov [#allocation7]   ;;  %s1349_s20 = smov [#allocation8]  }
  0x25   :  { %s42_s19 = sshll.u32 %s1348_s18, 4  ;;  %s51_s22 = sshll.u32 %s1349_s20, 4  ;;  %s43_s19 = int_to_ptr.vmem [resolvable:$true] %s42_s19  ;;  %s1414_s22 = int_to_ptr.vmem [resolvable:$true] %s51_s22 }
  0x26   :  { %s1270_s25 = scalar_lea.hbm %s1795_s2, 128 }
  0x27   :  { %p1271_p2 = scmp.ne.s32.totalorder %s1795_s2, %s1270_s25  ;;  %p1274_p3 = scmp.lt.u32.totalorder %s1270_s25, %s1795_s2 }
  0x29   :  { %p1276_p4 = pnand %p1274_p3, %p1271_p2 }
  0x2b   :  { %1279 = shalt.err (!%p1276_p4)
}
  0x2c   :  { %s1280_s0 = scalar_lea.vmem %s43_s19, 128  ;;  %p1285_p6 = scmp.lt.s32.totalorder %s43_s19, %s43_s19 }
  0x2d   :  { %p1281_p5 = scmp.ne.s32.totalorder %s43_s19, %s1280_s0  ;;  %p1286_p7 = scmp.lt.s32.totalorder %s1280_s0, %s1280_s0 }
  0x2f   :  { %p1287_p8 = por %p1286_p7, %p1285_p6 }
  0x31   :  { %p1288_p9 = pnand %p1287_p8, %p1281_p5 }
  0x33   :  { %1291 = shalt.err (!%p1288_p9)
}
  0x34   :  { %45 = dma.hbm_to_vmem [thread:$0]  %s1795_s2, 128, %s43_s19, [#allocation6]  }
  0x35   :  { %s1292_s8 = scalar_lea.hbm %s1796_s3, 16384 }
  0x36   :  { %p1293_p10 = scmp.ne.s32.totalorder %s1796_s3, %s1292_s8  ;;  %p1296_p11 = scmp.lt.u32.totalorder %s1292_s8, %s1796_s3 }
  0x38   :  { %p1298_p12 = pnand %p1296_p11, %p1293_p10 }
  0x3a   :  { %1301 = shalt.err (!%p1298_p12)
}
  0x3b   :  { %s1302_s13 = scalar_lea.vmem %s1414_s22, 16384  ;;  %p1307_p0 = scmp.lt.s32.totalorder %s1414_s22, %s1414_s22 }
  0x3c   :  { %p1303_p13 = scmp.ne.s32.totalorder %s1414_s22, %s1302_s13  ;;  %p1308_p1 = scmp.lt.s32.totalorder %s1302_s13, %s1302_s13 }
  0x3e   :  { %p1309_p2 = por %p1308_p1, %p1307_p0 }
  0x40   :  { %p1310_p3 = pnand %p1309_p2, %p1303_p13 }
  0x42   :  { %1313 = shalt.err (!%p1310_p3)
}
  0x43   :  { %s1350_s2 = smov 128   ;;  %s1351_s14 = smov 8  }
  0x44   :  { %57 = dma.hbm_to_vmem [thread:$0]  %s1796_s3, 16384, %s1414_s22, [#allocation9], %s1350_s2, %s1350_s2, %s1351_s14  }
  0x45   :  { %1336 = dma.done.wait [#allocation3], 1536  }
  0x46   :  { %1337 = vsyncadd [#allocation3], 4294965760 }
  0x47   :  { %1338 = dma.done.wait [#allocation6], 640  }
  0x48   :  { %1339 = vsyncadd [#allocation6], 4294966656 }
  0x49   :  { %1340 = dma.done.wait [#allocation9], 16384  }
  0x4a   :  { %1341 = vsyncadd [#allocation9], 4294950912  ;;  %v72_v0 = vld [vmem:[#allocation2] sm:$0xff]  ;;  %v73_v1 = vld [vmem:[#allocation2 + $0x8] sm:$0xff] }
  0x4b   :  { %v76_v2 = vld [vmem:[#allocation2 + $0x20] sm:$0xff]  ;;  %v89_v3 = vadd.f32 %v73_v1, %v72_v0  ;;  %v77_v4 = vld [vmem:[#allocation2 + $0x28] sm:$0xff]  ;;  %v74_v5 = vld [vmem:[#allocation2 + $0x10] sm:$0xff] }
  0x4c   :  { %v75_v6 = vld [vmem:[#allocation2 + $0x18] sm:$0xff]  ;;  %v354_v7 = vadd.f32 %v77_v4, %v76_v2  ;;  %v78_v8 = vld [vmem:[#allocation2 + $0x30] sm:$0xff]  ;;  %v80_v10 = vld [vmem:[#allocation2 + $0x40] sm:$0xff] }
  0x4d   :  { %v79_v9 = vld [vmem:[#allocation2 + $0x38] sm:$0xff]  ;;  %90 = vadd.xlane.f32.xlu0 %v89_v3  ;;  %v244_v11 = vadd.f32 %v75_v6, %v74_v5  ;;  %v81_v12 = vld [vmem:[#allocation2 + $0x48] sm:$0xff]  ;;  %v82_v13 = vld [vmem:[#allocation2 + $0x50] sm:$0xff] }
  0x4e   :  { %v83_v14 = vld [vmem:[#allocation2 + $0x58] sm:$0xff]  ;;  %355 = vadd.xlane.f32.xlu1 %v354_v7  ;;  %v92_v15 = vadd.f32 %v79_v9, %v78_v8  ;;  %v496_v16 = vld [vmem:[#allocation8 + $0x80] sm:$0xff]  ;;  %v497_v17 = vld [vmem:[#allocation8 + $0x88] sm:$0xff]  ;;  %v247_v28 = vadd.f32 %v81_v12, %v80_v10 }
  0x4f   :  { %v528_v18 = vld [vmem:[#allocation8 + $0x180] sm:$0xff]  ;;  %v1089_v19 = vpack.c.bf16 %v497_v17, %v496_v16  ;;  %v529_v20 = vld [vmem:[#allocation8 + $0x188] sm:$0xff]  ;;  %v498_v27 = vld [vmem:[#allocation8 + $0x90] sm:$0xff]  ;;  %v357_v33 = vadd.f32 %v83_v14, %v82_v13 }
  0x50   :  { %v480_v21 = vld [vmem:[#allocation8] sm:$0xff]  ;;  %v481_v22 = vld [vmem:[#allocation8 + $0x8] sm:$0xff]  ;;  %v1121_v23 = vpack.c.bf16 %v529_v20, %v528_v18  ;;  %v499_v30 = vld [vmem:[#allocation8 + $0x98] sm:$0xff] }
  0x51   :  { %v1091_v24 = vpack.c.bf16 %v481_v22, %v480_v21  ;;  %v512_v25 = vld [vmem:[#allocation8 + $0x100] sm:$0xff]  ;;  %v513_v26 = vld [vmem:[#allocation8 + $0x108] sm:$0xff]  ;;  %245 = vadd.xlane.f32.xlu0 %v244_v11  ;;  %1090 = vmatprep.subr.bf16.mxu0 %v1089_v19  ;;  %v530_v31 = vld [vmem:[#allocation8 + $0x190] sm:$0xff]  ;;  %v1093_v34 = vpack.c.bf16 %v499_v30, %v498_v27 }
  0x52   :  { %v1123_v29 = vpack.c.bf16 %v513_v26, %v512_v25  ;;  %v531_v32 = vld [vmem:[#allocation8 + $0x198] sm:$0xff]  ;;  %93 = vadd.xlane.f32.xlu1 %v92_v15  ;;  %1122 = vmatprep.subr.bf16.mxu1 %v1121_v23  ;;  %v482_v36 = vld [vmem:[#allocation8 + $0x10] sm:$0xff]  ;;  %v500_v41 = vld [vmem:[#allocation8 + $0xa0] sm:$0xff] }
  0x53   :  { %v1125_v35 = vpack.c.bf16 %v531_v32, %v530_v31  ;;  %v483_v37 = vld [vmem:[#allocation8 + $0x18] sm:$0xff]  ;;  %v514_v38 = vld [vmem:[#allocation8 + $0x110] sm:$0xff]  ;;  %1092 = vmatpush3.bf16.msra.mxu0 %v1091_v24  ;;  %v501_v42 = vld [vmem:[#allocation8 + $0xa8] sm:$0xff] }
  0x54   :  { %1124 = vmatpush3.bf16.msra.mxu1 %v1123_v29  ;;  %v1095_v39 = vpack.c.bf16 %v483_v37, %v482_v36  ;;  %v515_v40 = vld [vmem:[#allocation8 + $0x118] sm:$0xff]  ;;  %1094 = vmatprep.subr.bf16.mxu0 %v1093_v34  ;;  %v1097_v44 = vpack.c.bf16 %v501_v42, %v500_v41  ;;  %v532_v45 = vld [vmem:[#allocation8 + $0x1a0] sm:$0xff]  ;;  %v533_v46 = vld [vmem:[#allocation8 + $0x1a8] sm:$0xff] }
  0x55   :  { %1126 = vmatprep.subr.bf16.mxu1 %v1125_v35  ;;  %v1127_v43 = vpack.c.bf16 %v515_v40, %v514_v38  ;;  %v484_v47 = vld [vmem:[#allocation8 + $0x20] sm:$0xff]  ;;  %248 = vadd.xlane.f32.xlu0 %v247_v28  ;;  %v1129_v48 = vpack.c.bf16 %v533_v46, %v532_v45  ;;  %v485_v49 = vld [vmem:[#allocation8 + $0x28] sm:$0xff]  ;;  %v502_v52 = vld [vmem:[#allocation8 + $0xb0] sm:$0xff] }
  0x56   :  { %v516_v50 = vld [vmem:[#allocation8 + $0x120] sm:$0xff]  ;;  %v517_v51 = vld [vmem:[#allocation8 + $0x128] sm:$0xff]  ;;  %358 = vadd.xlane.f32.xlu1 %v357_v33  ;;  %v503_v53 = vld [vmem:[#allocation8 + $0xb8] sm:$0xff]  ;;  %v1099_v55 = vpack.c.bf16 %v485_v49, %v484_v47 }
  0x57   :  { %v534_v54 = vld [vmem:[#allocation8 + $0x1b0] sm:$0xff]  ;;  %1096 = vmatpush3.bf16.msra.mxu0 %v1095_v39  ;;  %v1131_v56 = vpack.c.bf16 %v517_v51, %v516_v50  ;;  %v535_v57 = vld [vmem:[#allocation8 + $0x1b8] sm:$0xff]  ;;  %v1101_v60 = vpack.c.bf16 %v503_v53, %v502_v52  ;;  %v504_v0 = vld [vmem:[#allocation8 + $0xc0] sm:$0xff] }
  0x58   :  { %1128 = vmatpush3.bf16.msra.mxu1 %v1127_v43  ;;  %v486_v58 = vld [vmem:[#allocation8 + $0x30] sm:$0xff]  ;;  %v487_v59 = vld [vmem:[#allocation8 + $0x38] sm:$0xff]  ;;  %1098 = vmatprep.subr.bf16.mxu0 %v1097_v44  ;;  %v1133_v61 = vpack.c.bf16 %v535_v57, %v534_v54  ;;  %v505_v1 = vld [vmem:[#allocation8 + $0xc8] sm:$0xff] }
  0x59   :  { %1130 = vmatprep.subr.bf16.mxu1 %v1129_v48  ;;  %v518_v62 = vld [vmem:[#allocation8 + $0x130] sm:$0xff]  ;;  %v519_v63 = vld [vmem:[#allocation8 + $0x138] sm:$0xff]  ;;  %v536_v2 = vld [vmem:[#allocation8 + $0x1c0] sm:$0xff]  ;;  %v1103_v4 = vpack.c.bf16 %v487_v59, %v486_v58  ;;  %v1105_v8 = vpack.c.bf16 %v505_v1, %v504_v0 }
  0x5a   :  { %v537_v3 = vld [vmem:[#allocation8 + $0x1c8] sm:$0xff]  ;;  %v1135_v5 = vpack.c.bf16 %v519_v63, %v518_v62  ;;  %v488_v6 = vld [vmem:[#allocation8 + $0x40] sm:$0xff]  ;;  %v506_v12 = vld [vmem:[#allocation8 + $0xd0] sm:$0xff] }
  0x5b   :  { %1100 = vmatpush3.bf16.msra.mxu0 %v1099_v55  ;;  %v489_v7 = vld [vmem:[#allocation8 + $0x48] sm:$0xff]  ;;  %v1137_v9 = vpack.c.bf16 %v537_v3, %v536_v2  ;;  %v520_v10 = vld [vmem:[#allocation8 + $0x140] sm:$0xff]  ;;  %v507_v13 = vld [vmem:[#allocation8 + $0xd8] sm:$0xff] }
  0x5c   :  { %1132 = vmatpush3.bf16.msra.mxu1 %v1131_v56  ;;  %1102 = vmatprep.subr.bf16.mxu0 %v1101_v60  ;;  %v521_v11 = vld [vmem:[#allocation8 + $0x148] sm:$0xff]  ;;  %v538_v14 = vld [vmem:[#allocation8 + $0x1d0] sm:$0xff]  ;;  %v539_v15 = vld [vmem:[#allocation8 + $0x1d8] sm:$0xff]  ;;  %v1107_v16 = vpack.c.bf16 %v489_v7, %v488_v6  ;;  %v1109_v20 = vpack.c.bf16 %v507_v13, %v506_v12  ;;  %v99_v56 = vlaneseq }
  0x5d   :  { %1134 = vmatprep.subr.bf16.mxu1 %v1133_v61  ;;  %v1139_v17 = vpack.c.bf16 %v521_v11, %v520_v10  ;;  %v490_v18 = vld [vmem:[#allocation8 + $0x50] sm:$0xff]  ;;  %v491_v19 = vld [vmem:[#allocation8 + $0x58] sm:$0xff]  ;;  %v1141_v21 = vpack.c.bf16 %v539_v15, %v538_v14  ;;  %v508_v24 = vld [vmem:[#allocation8 + $0xe0] sm:$0xff] }
  0x5e   :  { %v522_v22 = vld [vmem:[#allocation8 + $0x150] sm:$0xff]  ;;  %v523_v23 = vld [vmem:[#allocation8 + $0x158] sm:$0xff]  ;;  %v509_v25 = vld [vmem:[#allocation8 + $0xe8] sm:$0xff]  ;;  %v1111_v28 = vpack.c.bf16 %v491_v19, %v490_v18  ;;  %v1448_v57 = vshrl.u32 %v99_v56, 7 }
  0x5f   :  { %1104 = vmatpush3.bf16.msra.mxu0 %v1103_v4  ;;  %v540_v26 = vld [vmem:[#allocation8 + $0x1e0] sm:$0xff]  ;;  %v541_v27 = vld [vmem:[#allocation8 + $0x1e8] sm:$0xff]  ;;  %v1143_v29 = vpack.c.bf16 %v523_v23, %v522_v22  ;;  %v1113_v32 = vpack.c.bf16 %v509_v25, %v508_v24  ;;  %v510_v36 = vld [vmem:[#allocation8 + $0xf0] sm:$0xff] }
  0x60   :  { %1136 = vmatpush3.bf16.msra.mxu1 %v1135_v5  ;;  %1106 = vmatprep.subr.bf16.mxu0 %v1105_v8  ;;  %v492_v30 = vld [vmem:[#allocation8 + $0x60] sm:$0xff]  ;;  %v493_v31 = vld [vmem:[#allocation8 + $0x68] sm:$0xff]  ;;  %v1145_v33 = vpack.c.bf16 %v541_v27, %v540_v26  ;;  %v511_v37 = vld [vmem:[#allocation8 + $0xf8] sm:$0xff]  ;;  %v1451_v58 = vsub.s32 4, %v1448_v57  ;;  %v1454_v60 = vsub.s32 5, %v1448_v57  ;;  %v1457_v62 = vsub.s32 0, %v1448_v57 }
  0x61   :  { %1138 = vmatprep.subr.bf16.mxu1 %v1137_v9  ;;  %v524_v34 = vld [vmem:[#allocation8 + $0x160] sm:$0xff]  ;;  %v525_v35 = vld [vmem:[#allocation8 + $0x168] sm:$0xff]  ;;  %v542_v38 = vld [vmem:[#allocation8 + $0x1f0] sm:$0xff]  ;;  %v1115_v40 = vpack.c.bf16 %v493_v31, %v492_v30  ;;  %v1117_v44 = vpack.c.bf16 %v511_v37, %v510_v36  ;;  %v1460_v63 = vsub.s32 1, %v1448_v57  ;;  %v1463_v0 = vsub.s32 6, %v1448_v57 }
  0x62   :  { %v543_v39 = vld [vmem:[#allocation8 + $0x1f8] sm:$0xff]  ;;  %v1147_v41 = vpack.c.bf16 %v525_v35, %v524_v34  ;;  %v494_v42 = vld [vmem:[#allocation8 + $0x70] sm:$0xff]  ;;  %v560_v48 = vld [vmem:[#allocation8 + $0x280] sm:$0xff]  ;;  %1823 = vst [vmem:[#allocation15_spill] sm:$0xff] %v1451_v58  ;;  %v202_v2 = vsub.s32 3, %v1448_v57  ;;  %v1470_v4 = vsub.s32 2, %v1448_v57 }
  0x63   :  { %1108 = vmatpush3.bf16.msra.mxu0 %v1107_v16  ;;  %v495_v43 = vld [vmem:[#allocation8 + $0x78] sm:$0xff]  ;;  %v1149_v45 = vpack.c.bf16 %v543_v39, %v542_v38  ;;  %v526_v46 = vld [vmem:[#allocation8 + $0x170] sm:$0xff]  ;;  %v561_v49 = vld [vmem:[#allocation8 + $0x288] sm:$0xff]  ;;  %1824 = vst [vmem:[#allocation16_spill] sm:$0xff] %v1457_v62  ;;  %v218_v13 = vsub.s32 7, %v1448_v57 }
  0x64   :  { %1140 = vmatpush3.bf16.msra.mxu1 %v1139_v17  ;;  %1110 = vmatprep.subr.bf16.mxu0 %v1109_v20  ;;  %v527_v47 = vld [vmem:[#allocation8 + $0x178] sm:$0xff]  ;;  %v592_v50 = vld [vmem:[#allocation8 + $0x380] sm:$0xff]  ;;  %v593_v51 = vld [vmem:[#allocation8 + $0x388] sm:$0xff]  ;;  %v1119_v52 = vpack.c.bf16 %v495_v43, %v494_v42  ;;  %v1153_v54 = vpack.c.bf16 %v561_v49, %v560_v48  ;;  %1825 = vst [vmem:[#allocation17_spill] sm:$0xff] %v1460_v63 }
  0x65   :  { %1142 = vmatprep.subr.bf16.mxu1 %v1141_v21  ;;  %v1151_v53 = vpack.c.bf16 %v527_v47, %v526_v46  ;;  %v1185_v55 = vpack.c.bf16 %v593_v51, %v592_v50  ;;  %v84_v59 = vld [vmem:[#allocation5] sm:$0x77]  ;;  %v85_v61 = vld [vmem:[#allocation5 + $0x8] sm:$0x77]  ;;  %1826 = vst [vmem:[#allocation18_spill] sm:$0xff] %v1463_v0  ;;  %1828 = vst [vmem:[#allocation20_spill] sm:$0xff] %v1470_v4 }
  0x66   :  { %v106_v1 = vrot.slane %v84_v59, %v1451_v58  ;;  %v1467_v3 = vld [vmem:[#allocation7] sm:$0xff]  ;;  %v257_v5 = vrot.slane %v84_v59, %v1454_v60  ;;  %v367_v6 = vrot.slane %v84_v59, %v1463_v0  ;;  %v114_v7 = vrot.slane %v85_v61, %v1451_v58  ;;  %v1502_v22 = vld [vmem:[#allocation8 + $0x200] sm:$0xff]  ;;  %v1504_v23 = vld [vmem:[#allocation8 + $0x208] sm:$0xff] }
  0x67   :  { %1112 = vmatpush3.bf16.msra.mxu0 %v1111_v28  ;;  %1827 = vst [vmem:[#allocation19_spill] sm:$0xff] %v1467_v3  ;;  %v265_v8 = vrot.slane %v85_v61, %v1454_v60  ;;  %v375_v9 = vrot.slane %v85_v61, %v1463_v0  ;;  %v102_v10 = vrot.slane %v84_v59, %v1457_v62  ;;  %v1506_v24 = vld [vmem:[#allocation8 + $0x300] sm:$0xff]  ;;  %v1508_v25 = vld [vmem:[#allocation8 + $0x308] sm:$0xff]  ;;  %v1523_v31 = vld [vmem:[#allocation8 + $0x290] sm:$0xff] }
  0x68   :  { %1144 = vmatpush3.bf16.msra.mxu1 %v1143_v29  ;;  %1114 = vmatprep.subr.bf16.mxu0 %v1113_v32  ;;  %v253_v11 = vrot.slane %v84_v59, %v1460_v63  ;;  %v363_v12 = vrot.slane %v84_v59, %v1470_v4  ;;  %v1482_v14 = vrot.slane %v106_v1, %v1457_v62  ;;  %v1510_v26 = vld [vmem:[#allocation5 + $0x10] sm:$0x77]  ;;  %v1525_v32 = vld [vmem:[#allocation8 + $0x298] sm:$0xff]  ;;  %v1540_v38 = vld [vmem:[#allocation8 + $0x390] sm:$0xff] }
  0x69   :  { %1146 = vmatprep.subr.bf16.mxu1 %v1145_v33  ;;  %v1486_v15 = vrot.slane %v1467_v3, %v1460_v63  ;;  %v1489_v16 = vrot.slane %v1467_v3, %v202_v2  ;;  %v110_v17 = vrot.slane %v85_v61, %v1457_v62  ;;  %v1493_v18 = vrot.slane %v257_v5, %v1460_v63  ;;  %v1527_v33 = vld [vmem:[#allocation5 + $0x18] sm:$0x77]  ;;  %v1542_v39 = vld [vmem:[#allocation8 + $0x398] sm:$0xff]  ;;  %v1577_v56 = vld [vmem:[#allocation8 + $0x2a0] sm:$0xff] }
  0x6a   :  { %v1496_v19 = vrot.slane %v367_v6, %v1470_v4  ;;  %v1499_v20 = vrot.slane %v114_v7, %v1457_v62  ;;  %v261_v21 = vrot.slane %v85_v61, %v1460_v63  ;;  %1829 = vst [vmem:[#allocation21_spill] sm:$0xff] %v1510_v26  ;;  %v1513_v27 = vrot.slane %v265_v8, %v1460_v63  ;;  %v1547_v42 = vld [vmem:[#allocation8 + $0x218] sm:$0xff]  ;;  %v1549_v43 = vld [vmem:[#allocation8 + $0x310] sm:$0xff]  ;;  %v1579_v57 = vld [vmem:[#allocation8 + $0x2a8] sm:$0xff] }
  0x6b   :  { %1116 = vmatpush3.bf16.msra.mxu0 %v1115_v40  ;;  %v1516_v28 = vrot.slane %v375_v9, %v1470_v4  ;;  %v1520_v29 = vrot.slane %v1467_v3, %v1457_v62  ;;  %v371_v30 = vrot.slane %v85_v61, %v1470_v4  ;;  %1830 = vst [vmem:[#allocation22_spill] sm:$0xff] %v1527_v33  ;;  %v1544_v40 = vld [vmem:[#allocation8 + $0x210] sm:$0xff]  ;;  %1831 = vst [vmem:[#allocation23_spill] sm:$0xff] %v1577_v56 }
  0x6c   :  { %1148 = vmatpush3.bf16.msra.mxu1 %v1147_v41  ;;  %1118 = vmatprep.subr.bf16.mxu0 %v1117_v44  ;;  %v142_v34 = vrot.slane %v102_v10, %v1457_v62  ;;  %v1531_v35 = vrot.slane %v253_v11, %v1460_v63  ;;  %v1534_v36 = vrot.slane %v363_v12, %v1470_v4  ;;  %v1551_v44 = vld [vmem:[#allocation8 + $0x318] sm:$0xff] }
  0x6d   :  { %1150 = vmatprep.subr.bf16.mxu1 %v1149_v45  ;;  %v1538_v37 = vrot.slane %v1467_v3, %v1470_v4  ;;  %v150_v41 = vrot.slane %v110_v17, %v1457_v62  ;;  %v122_v45 = vrot.slane %v1510_v26, %v1451_v58  ;;  %v273_v46 = vrot.slane %v1510_v26, %v1454_v60 }
  0x6e   :  { %v383_v47 = vrot.slane %v1510_v26, %v1463_v0  ;;  %v1560_v48 = vrot.slane %v261_v21, %v1460_v63  ;;  %v130_v49 = vrot.slane %v1527_v33, %v1451_v58  ;;  %v281_v50 = vrot.slane %v1527_v33, %v1454_v60  ;;  %1832 = vst [vmem:[#allocation24_spill] sm:$0xff] %v1579_v57 }
  0x6f   :  { %1120 = vmatpush3.bf16.msra.mxu0 %v1119_v52  ;;  %v391_v51 = vrot.slane %v1527_v33, %v1463_v0  ;;  %v1569_v52 = vrot.slane %v371_v30, %v1470_v4  ;;  %v1589_v2 = vrot.slane %v1467_v3, %v1454_v60  ;;  %v1592_v5 = vrot.slane %v122_v45, %v1457_v62 }
  0x70   :  { %1152 = vmatpush3.bf16.msra.mxu1 %v1151_v53  ;;  %1154 = vmatprep.subr.bf16.mxu0 %v1153_v54  ;;  %v1595_v6 = vrot.slane %v273_v46, %v1460_v63  ;;  %v1598_v7 = vrot.slane %v383_v47, %v1470_v4  ;;  %v1601_v8 = vrot.slane %v1467_v3, %v218_v13 }
  0x71   :  { %1186 = vmatprep.subr.bf16.mxu1 %v1185_v55  ;;  %1833 = vst [vmem:[#allocation25_spill] sm:$0xff] %v1592_v5  ;;  %v1606_v10 = vrot.slane %v130_v49, %v1457_v62  ;;  %v1609_v60 = vrot.slane %v281_v50, %v1460_v63  ;;  %v1612_v11 = vrot.slane %v391_v51, %v1470_v4 }
  0x72   :  { %1834 = vst [vmem:[#allocation26_spill] sm:$0xff] %v1598_v7 }
  0x73   :  { %1836 = vst [vmem:[#allocation28_spill] sm:$0xff] %v1606_v10  ;;  %1837 = vst [vmem:[#allocation29_spill] sm:$0xff] %v1612_v11 }
  0xda   :  { %v1603_v9 = vpop.xlane.xlu0 %90 }
  0xdb   :  { %1835 = vst [vmem:[#allocation27_spill] sm:$0xff] %v1603_v9  ;;  %v1616_v17 = vpop.xlane.xlu1 %355  ;;  %v172_v13 = vmul.f32 %v1482_v14, %v1603_v9  ;;  %v174_v21 = vmul.f32 %v1499_v20, %v1603_v9  ;;  %v171_v30 = vmul.f32 %v142_v34, %v1603_v9  ;;  %v173_v45 = vmul.f32 %v150_v41, %v1603_v9 }
  0xdc   :  { %1838 = vst [vmem:[#allocation30_spill] sm:$0xff] %v1616_v17  ;;  %v433_v46 = vmul.f32 %v1496_v19, %v1616_v17  ;;  %v435_v47 = vmul.f32 %v1516_v28, %v1616_v17  ;;  %v432_v49 = vmul.f32 %v1534_v36, %v1616_v17  ;;  %v434_v50 = vmul.f32 %v1569_v52, %v1616_v17 }
  0xdd   :  { %v229_v51 = vadd.f32 %v1486_v15, %v172_v13  ;;  %v231_v12 = vadd.f32 %v1489_v16, %v174_v21  ;;  %v228_v1 = vadd.f32 %v1520_v29, %v171_v30  ;;  %v230_v61 = vadd.f32 %v1538_v37, %v173_v45 }
  0xde   :  { %v1636_v59 = vpop.xlane.xlu0 %245  ;;  %v176_v55 = vmul.f32 %v1592_v5, %v1603_v9  ;;  %v1642_v54 = vmul.f32 %v1598_v7, %v1616_v17  ;;  %v178_v53 = vmul.f32 %v1606_v10, %v1603_v9  ;;  %v1648_v13 = vmul.f32 %v1612_v11, %v1616_v17 }
  0xdf   :  { %v1650_v21 = vpop.xlane.xlu1 %93  ;;  %v323_v30 = vmul.f32 %v1493_v18, %v1636_v59  ;;  %v325_v45 = vmul.f32 %v1513_v27, %v1636_v59  ;;  %v322_v5 = vmul.f32 %v1531_v35, %v1636_v59  ;;  %v324_v7 = vmul.f32 %v1560_v48, %v1636_v59 }
  0xe0   :  { %v180_v10 = vmul.f32 %v1482_v14, %v1650_v21  ;;  %v182_v11 = vmul.f32 %v1499_v20, %v1650_v21  ;;  %v179_v17 = vmul.f32 %v142_v34, %v1650_v21  ;;  %v181_v9 = vmul.f32 %v150_v41, %v1650_v21 }
  0xe1   :  { %v339_v0 = vadd.f32 %v323_v30, %v229_v51  ;;  %v341_v3 = vadd.f32 %v325_v45, %v231_v12  ;;  %v338_v58 = vadd.f32 %v322_v5, %v228_v1  ;;  %v340_v4 = vadd.f32 %v324_v7, %v230_v61  ;;  %v549_v12 = vld [vmem:[#allocation8 + $0x228] sm:$0xff]  ;;  %v567_v51 = vld [vmem:[#allocation8 + $0x2b8] sm:$0xff]  ;;  %v598_v30 = vld [vmem:[#allocation8 + $0x3b0] sm:$0xff] }
  0xe2   :  { %v1666_v63 = vpop.xlane.xlu0 %248  ;;  %v237_v33 = vadd.f32 %v1486_v15, %v180_v10  ;;  %v239_v26 = vadd.f32 %v1489_v16, %v182_v11  ;;  %v236_v62 = vadd.f32 %v1520_v29, %v179_v17  ;;  %v238_v14 = vadd.f32 %v1538_v37, %v181_v9 }
  0xe3   :  { %v1672_v56 = vpop.xlane.xlu1 %358  ;;  %v449_v20 = vadd.f32 %v433_v46, %v339_v0  ;;  %v451_v34 = vadd.f32 %v435_v47, %v341_v3  ;;  %v448_v57 = vadd.f32 %v432_v49, %v338_v58  ;;  %v450_v41 = vadd.f32 %v434_v50, %v340_v4  ;;  %v581_v49 = vld [vmem:[#allocation8 + $0x328] sm:$0xff]  ;;  %v566_v50 = vld [vmem:[#allocation8 + $0x2b0] sm:$0xff] }
  0xe4   :  { %v331_v1 = vmul.f32 %v1493_v18, %v1666_v63  ;;  %v441_v61 = vmul.f32 %v1496_v19, %v1672_v56  ;;  %v333_v15 = vmul.f32 %v1513_v27, %v1666_v63  ;;  %v443_v16 = vmul.f32 %v1516_v28, %v1672_v56 }
  0xe5   :  { %v465_v29 = vmax.f32 %v449_v20, 0.0  ;;  %v467_v37 = vmax.f32 %v451_v34, 0.0  ;;  %v464_v5 = vmax.f32 %v448_v57, 0.0  ;;  %v466_v7 = vmax.f32 %v450_v41, 0.0  ;;  %v596_v57 = vld [vmem:[#allocation8 + $0x3a0] sm:$0xff] }
  0xe6   :  { %v347_v0 = vadd.f32 %v331_v1, %v237_v33  ;;  %v349_v3 = vadd.f32 %v333_v15, %v239_v26  ;;  %v330_v58 = vmul.f32 %v1531_v35, %v1666_v63  ;;  %v440_v4 = vmul.f32 %v1534_v36, %v1672_v56  ;;  %v597_v35 = vld [vmem:[#allocation8 + $0x3a8] sm:$0xff]  ;;  %v1845_v1 = vld [vmem:[#allocation24_spill] sm:$0xff] }
  0xe7   :  { %679 = vmatprep.mubr.f32.mxu0 %v465_v29  ;;  %754 = vmatprep.mubr.f32.mxu1 %v467_v37  ;;  %v332_v18 = vmul.f32 %v1560_v48, %v1666_v63  ;;  %v442_v19 = vmul.f32 %v1569_v52, %v1672_v56  ;;  %v233_v27 = vadd.f32 %v1589_v2, %v176_v55  ;;  %v550_v29 = vld [vmem:[#allocation8 + $0x230] sm:$0xff]  ;;  %v551_v37 = vld [vmem:[#allocation8 + $0x238] sm:$0xff] }
  0xe8   :  { %680 = vmatmul.mubr.f32.vlgmr.msra.gmra.mrb[0].mxu0 %v464_v5  ;;  %755 = vmatmul.mubr.f32.vlgmr.msra.gmra.mrb[0].mxu1 %v466_v7  ;;  %v457_v28 = vadd.f32 %v441_v61, %v347_v0  ;;  %v459_v26 = vadd.f32 %v443_v16, %v349_v3  ;;  %v346_v33 = vadd.f32 %v330_v58, %v236_v62  ;;  %v1846_v61 = vld [vmem:[#allocation23_spill] sm:$0xff]  ;;  %v568_v7 = vld [vmem:[#allocation8 + $0x2c0] sm:$0xff]  ;;  %v1848_v0 = vld [vmem:[#allocation16_spill] sm:$0xff] }
  0xe9   :  { %v1839_v36 = vpack.c.bf16 %v1504_v23, %v1502_v22  ;;  %v1840_v9 = vpack.c.bf16 %v1508_v25, %v1506_v24  ;;  %v348_v48 = vadd.f32 %v332_v18, %v238_v14  ;;  %v327_v52 = vmul.f32 %v1595_v6, %v1636_v59  ;;  %v548_v25 = vld [vmem:[#allocation8 + $0x220] sm:$0xff]  ;;  %v582_v5 = vld [vmem:[#allocation8 + $0x330] sm:$0xff]  ;;  %v601_v18 = vld [vmem:[#allocation8 + $0x3c8] sm:$0xff] }
  0xea   :  { %v235_v55 = vadd.f32 %v1601_v8, %v178_v53  ;;  %v473_v10 = vmax.f32 %v457_v28, 0.0  ;;  %v475_v11 = vmax.f32 %v459_v26, 0.0  ;;  %v1841_v62 = vpack.c.bf16 %v1525_v32, %v1523_v31  ;;  %v580_v53 = vld [vmem:[#allocation8 + $0x320] sm:$0xff] }
  0xeb   :  { %1156 = vmatpush3.bf16.msra.mxu0 %v1839_v36  ;;  %1188 = vmatpush3.bf16.msra.mxu1 %v1840_v9  ;;  %v1842_v22 = vpack.c.bf16 %v1542_v39, %v1540_v38  ;;  %v456_v23 = vadd.f32 %v440_v4, %v346_v33  ;;  %v329_v24 = vmul.f32 %v1609_v60, %v1636_v59  ;;  %v599_v38 = vld [vmem:[#allocation8 + $0x3b8] sm:$0xff]  ;;  %v1849_v3 = vld [vmem:[#allocation21_spill] sm:$0xff]  ;;  %v553_v33 = vld [vmem:[#allocation8 + $0x248] sm:$0xff] }
  0xec   :  { %1158 = vmatprep.subr.bf16.mxu0 %v1841_v62  ;;  %v458_v17 = vadd.f32 %v442_v19, %v348_v48  ;;  %v343_v46 = vadd.f32 %v327_v52, %v233_v27  ;;  %v1193_v47 = vpack.c.bf16 %v597_v35, %v596_v57  ;;  %684 = vmatprep.mubr.f32.mxu0 %v473_v10  ;;  %v600_v4 = vld [vmem:[#allocation8 + $0x3c0] sm:$0xff]  ;;  %v1850_v19 = vld [vmem:[#allocation22_spill] sm:$0xff]  ;;  %v1852_v9 = vld [vmem:[#allocation20_spill] sm:$0xff] }
  0xed   :  { %1190 = vmatprep.subr.bf16.mxu1 %v1842_v22  ;;  %759 = vmatprep.mubr.f32.mxu1 %v475_v11  ;;  %v472_v31 = vmax.f32 %v456_v23, 0.0  ;;  %v345_v32 = vadd.f32 %v329_v24, %v235_v55  ;;  %v1843_v45 = vpack.c.bf16 %v1547_v42, %v1544_v40  ;;  %v1844_v14 = vpack.c.bf16 %v1551_v44, %v1549_v43  ;;  %v583_v44 = vld [vmem:[#allocation8 + $0x338] sm:$0xff]  ;;  %v552_v26 = vld [vmem:[#allocation8 + $0x240] sm:$0xff]  ;;  %v585_v10 = vld [vmem:[#allocation8 + $0x348] sm:$0xff] }
  0xee   :  { %v474_v39 = vmax.f32 %v458_v17, 0.0  ;;  %v453_v20 = vadd.f32 %v1642_v54, %v343_v46  ;;  %v1163_v34 = vpack.c.bf16 %v549_v12, %v548_v25  ;;  %v1847_v15 = vpack.c.bf16 %v1845_v1, %v1846_v61  ;;  %v569_v54 = vld [vmem:[#allocation8 + $0x2c8] sm:$0xff]  ;;  %v584_v57 = vld [vmem:[#allocation8 + $0x340] sm:$0xff]  ;;  %v570_v11 = vld [vmem:[#allocation8 + $0x2d0] sm:$0xff] }
  0xef   :  { %1160 = vmatpush3.bf16.msra.mxu0 %v1843_v45  ;;  %1192 = vmatpush3.bf16.msra.mxu1 %v1844_v14  ;;  %v455_v41 = vadd.f32 %v1648_v13, %v345_v32  ;;  %v1195_v16 = vpack.c.bf16 %v581_v49, %v580_v53  ;;  %v1165_v42 = vpack.c.bf16 %v567_v51, %v566_v50  ;;  %v1851_v35 = vld [vmem:[#allocation17_spill] sm:$0xff]  ;;  %v571_v62 = vld [vmem:[#allocation8 + $0x2d8] sm:$0xff]  ;;  %v602_v24 = vld [vmem:[#allocation8 + $0x3d0] sm:$0xff] }
  0xf0   :  { %685 = vmatmul.mubr.f32.gmra.mrb[2].mxu0 %v472_v31  ;;  %1162 = vmatprep.subr.bf16.mxu0 %v1847_v15  ;;  %v469_v40 = vmax.f32 %v453_v20, 0.0  ;;  %v1197_v43 = vpack.c.bf16 %v599_v38, %v598_v30  ;;  %v118_v58 = vrot.slane %v1849_v3, %v1848_v0  ;;  %v126_v27 = vrot.slane %v1850_v19, %v1848_v0  ;;  %v603_v25 = vld [vmem:[#allocation8 + $0x3d8] sm:$0xff]  ;;  %v554_v12 = vld [vmem:[#allocation8 + $0x250] sm:$0xff]  ;;  %v572_v38 = vld [vmem:[#allocation8 + $0x2e0] sm:$0xff] }
  0xf1   :  { %760 = vmatmul.mubr.f32.gmra.mrb[2].mxu1 %v474_v39  ;;  %1194 = vmatprep.subr.bf16.mxu1 %v1193_v47  ;;  %v471_v13 = vmax.f32 %v455_v41, 0.0  ;;  %v1167_v28 = vpack.c.bf16 %v551_v37, %v550_v29  ;;  %v269_v36 = vrot.slane %v1849_v3, %v1851_v35  ;;  %v379_v48 = vrot.slane %v1849_v3, %v1852_v9  ;;  %v555_v47 = vld [vmem:[#allocation8 + $0x258] sm:$0xff]  ;;  %v586_v53 = vld [vmem:[#allocation8 + $0x350] sm:$0xff]  ;;  %v573_v39 = vld [vmem:[#allocation8 + $0x2e8] sm:$0xff] }
  0xf2   :  { %829 = vmatprep.mubr.f32.mxu0 %v469_v40  ;;  %v1199_v52 = vpack.c.bf16 %v583_v44, %v582_v5  ;;  %v1169_v55 = vpack.c.bf16 %v569_v54, %v568_v7  ;;  %v277_v22 = vrot.slane %v1850_v19, %v1851_v35  ;;  %v1201_v23 = vpack.c.bf16 %v601_v18, %v600_v4  ;;  %v587_v49 = vld [vmem:[#allocation8 + $0x358] sm:$0xff]  ;;  %v1853_v50 = vld [vmem:[#allocation15_spill] sm:$0xff]  ;;  %v604_v45 = vld [vmem:[#allocation8 + $0x3e0] sm:$0xff] }
  0xf3   :  { %1164 = vmatpush3.bf16.msra.mxu0 %v1163_v34  ;;  %904 = vmatprep.mubr.f32.mxu1 %v471_v13  ;;  %v158_v17 = vrot.slane %v118_v58, %v1848_v0  ;;  %v387_v46 = vrot.slane %v1850_v19, %v1852_v9  ;;  %v1854_v31 = vld [vmem:[#allocation19_spill] sm:$0xff]  ;;  %v166_v51 = vrot.slane %v126_v27, %v1848_v0  ;;  %v1855_v34 = vld [vmem:[#allocation18_spill] sm:$0xff]  ;;  %v588_v40 = vld [vmem:[#allocation8 + $0x360] sm:$0xff] }
  0xf4   :  { %1196 = vmatpush3.bf16.msra.mxu1 %v1195_v16  ;;  %1166 = vmatprep.subr.bf16.mxu0 %v1165_v42  ;;  %v1734_v32 = vrot.slane %v1854_v31, %v1853_v50  ;;  %v1171_v30 = vpack.c.bf16 %v553_v33, %v552_v26  ;;  %v309_v14 = vrot.slane %v269_v36, %v1851_v35  ;;  %v605_v15 = vld [vmem:[#allocation8 + $0x3e8] sm:$0xff]  ;;  %v556_v16 = vld [vmem:[#allocation8 + $0x260] sm:$0xff]  ;;  %v1858_v4 = vld [vmem:[#allocation28_spill] sm:$0xff] }
  0xf5   :  { %1198 = vmatprep.subr.bf16.mxu1 %v1197_v43  ;;  %v1739_v20 = vrot.slane %v379_v48, %v1852_v9  ;;  %v215_v41 = vrot.slane %v1854_v31, %v1855_v34  ;;  %v1203_v1 = vpack.c.bf16 %v585_v10, %v584_v57  ;;  %v1173_v61 = vpack.c.bf16 %v571_v62, %v570_v11  ;;  %v557_v29 = vld [vmem:[#allocation8 + $0x268] sm:$0xff]  ;;  %v1856_v43 = vld [vmem:[#allocation27_spill] sm:$0xff]  ;;  %v1857_v54 = vld [vmem:[#allocation25_spill] sm:$0xff] }
  0xf6   :  { %v317_v37 = vrot.slane %v277_v22, %v1851_v35  ;;  %v1205_v5 = vpack.c.bf16 %v603_v25, %v602_v24  ;;  %v589_v42 = vld [vmem:[#allocation8 + $0x368] sm:$0xff]  ;;  %v175_v44 = vmul.f32 %v158_v17, %v1856_v43  ;;  %v427_v7 = vrot.slane %v387_v46, %v1852_v9  ;;  %v574_v26 = vld [vmem:[#allocation8 + $0x2f0] sm:$0xff]  ;;  %v575_v33 = vld [vmem:[#allocation8 + $0x2f8] sm:$0xff] }
  0xf7   :  { %1168 = vmatpush3.bf16.msra.mxu0 %v1167_v28  ;;  %v184_v0 = vmul.f32 %v1857_v54, %v1650_v21  ;;  %v1175_v3 = vpack.c.bf16 %v555_v47, %v554_v12  ;;  %v1207_v58 = vpack.c.bf16 %v587_v49, %v586_v53  ;;  %v177_v13 = vmul.f32 %v166_v51, %v1856_v43  ;;  %v606_v36 = vld [vmem:[#allocation8 + $0x3f0] sm:$0xff]  ;;  %v607_v9 = vld [vmem:[#allocation8 + $0x3f8] sm:$0xff]  ;;  %v1859_v46 = vld [vmem:[#allocation30_spill] sm:$0xff] }
  0xf8   :  { %1200 = vmatpush3.bf16.msra.mxu1 %v1199_v52  ;;  %1170 = vmatprep.subr.bf16.mxu0 %v1169_v55  ;;  %v186_v18 = vmul.f32 %v1858_v4, %v1650_v21  ;;  %v1177_v19 = vpack.c.bf16 %v573_v39, %v572_v38  ;;  %v1209_v27 = vpack.c.bf16 %v605_v15, %v604_v45  ;;  %v558_v12 = vld [vmem:[#allocation8 + $0x270] sm:$0xff]  ;;  %v591_v53 = vld [vmem:[#allocation8 + $0x378] sm:$0xff]  ;;  %v1860_v31 = vld [vmem:[#allocation26_spill] sm:$0xff] }
  0xf9   :  { %1202 = vmatprep.subr.bf16.mxu1 %v1201_v23  ;;  %v1179_v28 = vpack.c.bf16 %v557_v29, %v556_v16  ;;  %v326_v57 = vmul.f32 %v309_v14, %v1636_v59  ;;  %v1211_v35 = vpack.c.bf16 %v589_v42, %v588_v40  ;;  %v328_v48 = vmul.f32 %v317_v37, %v1636_v59  ;;  %v1861_v45 = vld [vmem:[#allocation29_spill] sm:$0xff] }
  0xfa   :  { %v183_v52 = vmul.f32 %v158_v17, %v1650_v21  ;;  %v232_v55 = vadd.f32 %v1734_v32, %v175_v44  ;;  %v241_v10 = vadd.f32 %v1589_v2, %v184_v0  ;;  %v335_v11 = vmul.f32 %v1595_v6, %v1666_v63  ;;  %v559_v6 = vld [vmem:[#allocation8 + $0x278] sm:$0xff] }
  0xfb   :  { %1172 = vmatpush3.bf16.msra.mxu0 %v1171_v30  ;;  %v185_v62 = vmul.f32 %v166_v51, %v1650_v21  ;;  %v1181_v22 = vpack.c.bf16 %v575_v33, %v574_v26  ;;  %v234_v23 = vadd.f32 %v215_v41, %v177_v13  ;;  %v243_v24 = vadd.f32 %v1601_v8, %v186_v18  ;;  %v590_v21 = vld [vmem:[#allocation8 + $0x370] sm:$0xff] }
  0xfc   :  { %1204 = vmatpush3.bf16.msra.mxu1 %v1203_v1  ;;  %1174 = vmatprep.subr.bf16.mxu0 %v1173_v61  ;;  %v337_v25 = vmul.f32 %v1609_v60, %v1666_v63  ;;  %v1213_v59 = vpack.c.bf16 %v607_v9, %v606_v36  ;;  %v342_v17 = vadd.f32 %v326_v57, %v232_v55 }
  0xfd   :  { %1206 = vmatprep.subr.bf16.mxu1 %v1205_v5  ;;  %v436_v47 = vmul.f32 %v1739_v20, %v1859_v46  ;;  %v438_v2 = vmul.f32 %v427_v7, %v1859_v46  ;;  %v344_v49 = vadd.f32 %v328_v48, %v234_v23  ;;  %v240_v8 = vadd.f32 %v1734_v32, %v183_v52 }
  0xfe   :  { %v334_v50 = vmul.f32 %v309_v14, %v1666_v63  ;;  %v351_v60 = vadd.f32 %v335_v11, %v241_v10  ;;  %v445_v51 = vmul.f32 %v1860_v31, %v1672_v56  ;;  %v242_v30 = vadd.f32 %v215_v41, %v185_v62 }
  0xff   :  { %1176 = vmatpush3.bf16.msra.mxu0 %v1175_v3  ;;  %v336_v38 = vmul.f32 %v317_v37, %v1666_v63  ;;  %v353_v39 = vadd.f32 %v337_v25, %v243_v24  ;;  %v447_v34 = vmul.f32 %v1861_v45, %v1672_v56  ;;  %v1183_v1 = vpack.c.bf16 %v559_v6, %v558_v12 }
 0x100   :  { %1208 = vmatpush3.bf16.msra.mxu1 %v1207_v58  ;;  %1178 = vmatprep.subr.bf16.mxu0 %v1177_v19  ;;  %v1215_v61 = vpack.c.bf16 %v591_v53, %v590_v21  ;;  %v452_v32 = vadd.f32 %v436_v47, %v342_v17  ;;  %v350_v15 = vadd.f32 %v334_v50, %v240_v8 }
 0x101   :  { %1210 = vmatprep.subr.bf16.mxu1 %v1209_v27  ;;  %v444_v14 = vmul.f32 %v1739_v20, %v1672_v56  ;;  %v454_v16 = vadd.f32 %v438_v2, %v344_v49  ;;  %v461_v29 = vadd.f32 %v445_v51, %v351_v60  ;;  %v352_v41 = vadd.f32 %v336_v38, %v242_v30 }
 0x102   :  { %v446_v63 = vmul.f32 %v427_v7, %v1672_v56  ;;  %v463_v37 = vadd.f32 %v447_v34, %v353_v39  ;;  %v468_v5 = vmax.f32 %v452_v32, 0.0  ;;  %v936_v56 = vld [vmem:[%s1797_s4] ss:$0 sm:$0xff]  ;;  %s1352_s4 = smov [#allocation10]  }
 0x103   :  { %1180 = vmatpush3.bf16.msra.mxu0 %v1179_v28  ;;  %v460_v40 = vadd.f32 %v444_v14, %v350_v15  ;;  %v470_v42 = vmax.f32 %v454_v16, 0.0  ;;  %v477_v43 = vmax.f32 %v461_v29, 0.0  ;;  %s922_s17 = sshll.u32 %s1352_s4, 4  ;;  %s923_s17 = int_to_ptr.vmem [resolvable:$true] %s922_s17 }
 0x104   :  { %1212 = vmatpush3.bf16.msra.mxu1 %v1211_v35  ;;  %1182 = vmatprep.subr.bf16.mxu0 %v1181_v22  ;;  %v462_v44 = vadd.f32 %v446_v63, %v352_v41  ;;  %v479_v54 = vmax.f32 %v463_v37, 0.0  ;;  %s1314_s18 = scalar_lea.vmem %s923_s17, 256  ;;  %p1319_p5 = scmp.lt.s32.totalorder %s923_s17, %s923_s17 }
 0x105   :  { %1214 = vmatprep.subr.bf16.mxu1 %v1213_v59  ;;  %v476_v20 = vmax.f32 %v460_v40, 0.0  ;;  %p1315_p4 = scmp.ne.s32.totalorder %s923_s17, %s1314_s18  ;;  %p1320_p6 = scmp.lt.s32.totalorder %s1314_s18, %s1314_s18 }
 0x106   :  { %v478_v0 = vmax.f32 %v462_v44, 0.0 }
 0x107   :  { %1184 = vmatpush3.bf16.msra.mxu0 %v1183_v1  ;;  %p1321_p7 = por %p1320_p6, %p1319_p5 }
 0x108   :  { %1216 = vmatpush3.bf16.msra.mxu1 %v1215_v61 }
 0x109   :  { %p1322_p8 = pnand %p1321_p7, %p1315_p4 }
 0x10a   :  { %830 = vmatmul.mubr.f32.vlgmr.msra.gmra.mrb[4].mxu0 %v468_v5 }
 0x10b   :  { %905 = vmatmul.mubr.f32.vlgmr.msra.gmra.mrb[4].mxu1 %v470_v42  ;;  %834 = vmatprep.mubr.f32.mxu0 %v477_v43 }
 0x10c   :  { %909 = vmatprep.mubr.f32.mxu1 %v479_v54 }
 0x10e   :  { %835 = vmatmul.mubr.f32.gmra.mrb[6].mxu0 %v476_v20 }
 0x10f   :  { %910 = vmatmul.mubr.f32.gmra.mrb[6].mxu1 %v478_v0 }
 0x1bb   :  { %v969_v3 = vpop.f32.mrb[0].mxu0  ;;  %v1007_v58 = vpop.f32.mrb[0].mxu1 }
 0x1bc   :  { %v970_v7 = vpop.f32.mrb[1].mxu0  ;;  %v1008_v13 = vpop.f32.mrb[1].mxu1 }
 0x1bd   :  { %v971_v4 = vadd.f32 %v970_v7, %v969_v3  ;;  %v1009_v18 = vadd.f32 %v1008_v13, %v1007_v58 }
 0x1bf   :  { %v682_v19 = vadd.f32 %v971_v4, %v936_v56 }
 0x1c1   :  { %v757_v27 = vadd.f32 %v1009_v18, %v682_v19 }
 0x1c3   :  { %v972_v28 = vpop.f32.mrb[2].mxu0 }
 0x1c4   :  { %v973_v26 = vpop.f32.mrb[3].mxu0  ;;  %v1010_v33 = vpop.f32.mrb[2].mxu1 }
 0x1c5   :  { %v974_v57 = vadd.f32 %v973_v26, %v972_v28  ;;  %v1011_v35 = vpop.f32.mrb[3].mxu1 }
 0x1c6   :  { %v1012_v36 = vadd.f32 %v1011_v35, %v1010_v33 }
 0x1c7   :  { %v687_v9 = vadd.f32 %v974_v57, %v936_v56 }
 0x1c9   :  { %v762_v48 = vadd.f32 %v1012_v36, %v687_v9 }
 0x1dd   :  { %v1045_v52 = vpop.f32.mrb[4].mxu0 }
 0x1de   :  { %v1083_v55 = vpop.f32.mrb[4].mxu1  ;;  %v1046_v10 = vpop.f32.mrb[5].mxu0 }
 0x1df   :  { %v1047_v11 = vadd.f32 %v1046_v10, %v1045_v52  ;;  %v1084_v62 = vpop.f32.mrb[5].mxu1 }
 0x1e0   :  { %v1085_v22 = vadd.f32 %v1084_v62, %v1083_v55 }
 0x1e1   :  { %v832_v23 = vadd.f32 %v1047_v11, %v757_v27  ;;  %v1048_v24 = vpop.f32.mrb[6].mxu0 }
 0x1e2   :  { %v1086_v25 = vpop.f32.mrb[6].mxu1  ;;  %v1049_v59 = vpop.f32.mrb[7].mxu0 }
 0x1e3   :  { %v907_v12 = vadd.f32 %v1085_v22, %v832_v23  ;;  %v1050_v17 = vadd.f32 %v1049_v59, %v1048_v24  ;;  %v1087_v46 = vpop.f32.mrb[7].mxu1 }
 0x1e4   :  { %v1088_v47 = vadd.f32 %v1087_v46, %v1086_v25 }
 0x1e5   :  { %915 = vst [vmem:[#allocation10] sm:$0xff] %v907_v12  ;;  %v837_v2 = vadd.f32 %v1050_v17, %v762_v48 }
 0x1e7   :  { %v912_v6 = vadd.f32 %v1088_v47, %v837_v2 }
 0x1e9   :  { %916 = vst [vmem:[#allocation10 + $0x8] sm:$0xff] %v912_v6 }
 0x1ea   :  { %1325 = shalt.err (!%p1322_p8)
}
 0x1eb   :  { %s1326_s22 = scalar_lea.hbm %s1798_s5, 256 }
 0x1ec   :  { %p1327_p9 = scmp.ne.s32.totalorder %s1798_s5, %s1326_s22  ;;  %p1330_p10 = scmp.lt.u32.totalorder %s1326_s22, %s1798_s5 }
 0x1ee   :  { %p1332_p11 = pnand %p1330_p10, %p1327_p9 }
 0x1f0   :  { %1335 = shalt.err (!%p1332_p11)
}
 0x1f1   :  { %928 = dma.vmem_to_hbm [thread:$0]  %s923_s17, 256, %s1798_s5, [#allocation4], %s1350_s2, %s1350_s2, %s1351_s14  }
 0x1f2   :  { %1342 = dma.done.wait [#allocation4], 256  }
 0x1f3   :  { %1343 = vsyncadd [#allocation4], 4294967040 }
 0x1f4   :  { %932 = vsyncpa [#allocation3], 1 }
 0x1f5   :  { %933 = vsyncpa [#allocation6], 1 }
 0x1f6   :  { %934 = vsyncpa [#allocation9], 1 }
 0x1f7   :  { %935 = vsyncpa [#allocation4], 1 }

</bundles_post_ra>
